<compile_context>
chip_gen: v5e
topology: v5e:2x2
jax: 0.10.0
libtpu: 0.0.40
codegen_flags: <defaults>
</compile_context>

<pallas_src>
import functools

import jax
import jax.numpy as jnp
from jax.experimental import pallas as pl
from jax.experimental.pallas import tpu as pltpu

LANE = 128        # lane-dim alignment (last dim)
ROW_ALIGN = 16    # row-tile alignment: covers f32 sublane (8) and bf16 packing (16)
_FALLBACK_VMEM = 64 * 1024 * 1024


def _round_up(x, m):
    return ((x + m - 1) // m) * m


def _vmem_limit_bytes():
    """~80% of this generation's physical VMEM per TensorCore; 64 MiB fallback."""
    try:
        cap = int(pltpu.get_tpu_info().vmem_capacity_bytes)
        return max(32 * 1024 * 1024, int(0.8 * cap))
    except Exception:
        return _FALLBACK_VMEM


def mlp_kernel(x_ref, w1_ref, b1_ref, w2_ref, b2_ref, y_ref):
    # Layer 1: x @ W1t + b1, ReLU.  W1t is (D_in_p, H_p): native (K, N) MXU feed,
    # no in-kernel transpose.  Accumulate in f32 even for bf16 inputs.
    h = jnp.dot(x_ref[...], w1_ref[...], preferred_element_type=jnp.float32)
    h = jnp.maximum(h + b1_ref[...], 0.0)                   # (TN, H_p) + (1, H_p)

    # Layer 2: h @ W2t + b2.  W2t is (H_p, D_out_p); f32 accumulation.
    y = jnp.dot(h.astype(w2_ref.dtype), w2_ref[...],
                preferred_element_type=jnp.float32)
    y_ref[...] = (y + b2_ref[...]).astype(y_ref.dtype)      # (TN, D_out_p)


def prepare_params(w1, b1, w2, b2, compute_dtype=jnp.bfloat16):
    """Pad + transpose params ONCE (outside any inference/training loop).

    torch.nn.Linear layout in : w1 (H, D_in), b1 (H,), w2 (D_out, H), b2 (D_out,)
    Stored out (K, N) layout  : w1t (D_in_p, H_p), w2t (H_p, D_out_p)
    Padding is zeros (see invariant at the top of the file).
    """
    H, D_in = w1.shape
    D_out = w2.shape[0]
    D_in_p = _round_up(D_in, LANE)
    H_p = _round_up(H, LANE)
    D_out_p = _round_up(D_out, LANE)

    w1t = jnp.zeros((D_in_p, H_p), compute_dtype).at[:D_in, :H].set(
        w1.T.astype(compute_dtype))
    w2t = jnp.zeros((H_p, D_out_p), compute_dtype).at[:H, :D_out].set(
        w2.T.astype(compute_dtype))
    # Biases stay f32: they are added to the f32 accumulator.
    b1_p = jnp.zeros((1, H_p), jnp.float32).at[0, :H].set(b1.astype(jnp.float32))
    b2_p = jnp.zeros((1, D_out_p), jnp.float32).at[0, :D_out].set(
        b2.astype(jnp.float32))
    return (w1t, b1_p, w2t, b2_p), (D_in, H, D_out)


@functools.partial(jax.jit,
                   static_argnames=("dims", "block_rows", "stream_buffers"))
def two_layer_net(x, params, dims, *, block_rows=512, stream_buffers=2):
    """Forward pass matching TwoLayerNet: relu(x @ W1^T + b1) @ W2^T + b2.

    x: (N, D_in) float32; params from prepare_params(); returns (N, D_out) f32.
    """
    w1t, b1_p, w2t, b2_p = params
    D_in, H, D_out = dims
    N = x.shape[0]
    D_in_p, H_p = w1t.shape
    D_out_p = w2t.shape[1]
    compute_dtype = w1t.dtype
    wsz = jnp.dtype(compute_dtype).itemsize

    vmem_limit = _vmem_limit_bytes()

    # Resident, single-buffered weights + biases must fit comfortably in VMEM.
    resident_bytes = (D_in_p * H_p + H_p * D_out_p) * wsz + (H_p + D_out_p) * 4
    if resident_bytes > int(0.6 * vmem_limit):
        # TODO(synk): stream W1/W2 over an extra "arbitrary" K/H grid axis with a
        # pl.when-initialized accumulator instead of keeping them VMEM-resident.
        raise NotImplementedError(
            f"Resident weights need {resident_bytes} bytes which exceeds the "
            f"VMEM budget of {vmem_limit} bytes; streamed-weight fallback is "
            f"not implemented.")

    # Row tile: aim for >= 2 grid steps when N allows it (so the 'parallel' axis
    # can shard across v7x's two TensorCores), cap at block_rows, keep it
    # ROW_ALIGN-aligned, and shrink if the VMEM budget gets tight.
    if N <= ROW_ALIGN:
        TN = ROW_ALIGN
    else:
        TN = min(_round_up(block_rows, ROW_ALIGN),
                 _round_up(pl.cdiv(N, 2), ROW_ALIGN))

    def _tile_bytes(tn):
        return (stream_buffers * tn * D_in_p * wsz   # streamed x tiles
                + 2 * tn * D_out_p * 4               # double-buffered y tiles
                + tn * H_p * (4 + wsz))              # f32 hidden + cast copy

    while TN > ROW_ALIGN and (resident_bytes + _tile_bytes(TN)
                              > int(0.85 * vmem_limit)):
        TN = max(ROW_ALIGN, _round_up(TN // 2, ROW_ALIGN))

    grid_n = pl.cdiv(N, TN)
    N_p = grid_n * TN

    # Hot-path padding: only x (ragged batch tail + lane padding).
    x_p = jnp.zeros((N_p, D_in_p), compute_dtype).at[:N, :D_in].set(
        x.astype(compute_dtype))

    # Streamed x tile; bump to Buffered(3) only when explicitly requested
    # (mem-bound small-H regimes with exposed DMA).
    if stream_buffers != 2:
        x_spec = pl.BlockSpec((TN, D_in_p), lambda i: (i, 0),
                              pipeline_mode=pl.Buffered(stream_buffers))
    else:
        x_spec = pl.BlockSpec((TN, D_in_p), lambda i: (i, 0))

    y_p = pl.pallas_call(
        mlp_kernel,
        out_shape=jax.ShapeDtypeStruct((N_p, D_out_p), jnp.float32),
        grid_spec=pltpu.PrefetchScalarGridSpec(
            num_scalar_prefetch=0,
            grid=(grid_n,),
            in_specs=[
                x_spec,                                              # x: streamed
                pl.BlockSpec((D_in_p, H_p), lambda i: (0, 0),
                             pipeline_mode=pl.Buffered(1)),          # W1t resident
                pl.BlockSpec((1, H_p), lambda i: (0, 0),
                             pipeline_mode=pl.Buffered(1)),          # b1 resident
                pl.BlockSpec((H_p, D_out_p), lambda i: (0, 0),
                             pipeline_mode=pl.Buffered(1)),          # W2t resident
                pl.BlockSpec((1, D_out_p), lambda i: (0, 0),
                             pipeline_mode=pl.Buffered(1)),          # b2 resident
            ],
            out_specs=pl.BlockSpec((TN, D_out_p), lambda i: (i, 0)),
        ),
        compiler_params=pltpu.CompilerParams(
            dimension_semantics=("parallel",),
            vmem_limit_bytes=int(vmem_limit),
        ),
    )(x_p, w1t, b1_p, w2t, b2_p)

    # Strip row / lane padding.
    return y_p[:N, :D_out]


if __name__ == "__main__":
    # Small shapes consistent with the module: N x D_in -> H -> D_out.
    N, D_in, H, D_out = 8, 32, 64, 16

    key = jax.random.PRNGKey(0)
    kx, k1w, k1b, k2w, k2b = jax.random.split(key, 5)

    x = jax.random.normal(kx, (N, D_in), dtype=jnp.float32)

    # Deterministic init mimicking torch.nn.Linear: U(-1/sqrt(fan_in), 1/sqrt(fan_in)).
    bound1 = 1.0 / jnp.sqrt(jnp.float32(D_in))
    w1 = jax.random.uniform(k1w, (H, D_in), jnp.float32, -bound1, bound1)
    b1 = jax.random.uniform(k1b, (H,), jnp.float32, -bound1, bound1)
    bound2 = 1.0 / jnp.sqrt(jnp.float32(H))
    w2 = jax.random.uniform(k2w, (D_out, H), jnp.float32, -bound2, bound2)
    b2 = jax.random.uniform(k2b, (D_out,), jnp.float32, -bound2, bound2)

    # Pure-JAX reference (matches PyTorch semantics).
    y_ref = jnp.maximum(x @ w1.T + b1, 0.0) @ w2.T + b2

    # Exact f32 compute path.
    params_f32, dims = prepare_params(w1, b1, w2, b2, compute_dtype=jnp.float32)
    y_f32 = two_layer_net(x, params_f32, dims)
    jax.block_until_ready(y_f32)
    assert y_f32.shape == (N, D_out)
    assert jnp.allclose(y_f32, y_ref, atol=1e-5, rtol=1e-5)

    # Default bf16-compute / f32-accumulate path (MXU fast path): loose check.
    params_bf16, dims = prepare_params(w1, b1, w2, b2)   # bf16 default
    y_bf16 = two_layer_net(x, params_bf16, dims)
    jax.block_until_ready(y_bf16)
    assert y_bf16.shape == (N, D_out)
    assert jnp.allclose(y_bf16, y_ref, atol=5e-2, rtol=5e-2)

    print("KERNEL_OK")
</pallas_src>

<mosaic_0001>
module attributes {stable_mosaic.version = 11 : i64} {
  func.func @mlp_kernel(%arg0: i32, %arg1: memref<16x128xf32, #tpu.memory_space<vmem>>, %arg2: memref<128x128xf32, #tpu.memory_space<vmem>>, %arg3: memref<1x128xf32, #tpu.memory_space<vmem>>, %arg4: memref<128x128xf32, #tpu.memory_space<vmem>>, %arg5: memref<1x128xf32, #tpu.memory_space<vmem>>, %arg6: memref<16x128xf32, #tpu.memory_space<vmem>>) attributes {dimension_semantics = [#tpu.dimension_semantics<parallel>], iteration_bounds = array<i64: 1>, scalar_prefetch = 0 : i64, scratch_operands = 0 : i64, tpu.core_type = #tpu.core_type<tc>, window_params = [{transform_indices = @transform_0, window_bounds = array<i64: 16, 128>}, {pipeline_mode = #tpu.pipeline_mode<synchronous>, transform_indices = @transform_1, window_bounds = array<i64: 128, 128>}, {pipeline_mode = #tpu.pipeline_mode<synchronous>, transform_indices = @transform_2, window_bounds = array<i64: 1, 128>}, {pipeline_mode = #tpu.pipeline_mode<synchronous>, transform_indices = @transform_3, window_bounds = array<i64: 128, 128>}, {pipeline_mode = #tpu.pipeline_mode<synchronous>, transform_indices = @transform_4, window_bounds = array<i64: 1, 128>}, {transform_indices = @transform_5, window_bounds = array<i64: 16, 128>}]} {
    %c0 = arith.constant 0 : index
    %c0_0 = arith.constant 0 : index
    %0 = vector.load %arg1[%c0, %c0_0] : memref<16x128xf32, #tpu.memory_space<vmem>>, vector<16x128xf32>
    %c0_1 = arith.constant 0 : index
    %c0_2 = arith.constant 0 : index
    %1 = vector.load %arg2[%c0_1, %c0_2] : memref<128x128xf32, #tpu.memory_space<vmem>>, vector<128x128xf32>
    %cst = arith.constant dense<0.000000e+00> : vector<16x128xf32>
    %2 = tpu.matmul %0, %1, %cst {dimension_numbers = #tpu.dot_dimension_numbers<[1], [0], [0], [1], [0, 0, 1, 1], [], []>} : vector<16x128xf32>, vector<128x128xf32>, vector<16x128xf32> -> vector<16x128xf32>
    %c0_3 = arith.constant 0 : index
    %c0_4 = arith.constant 0 : index
    %3 = vector.load %arg3[%c0_3, %c0_4] : memref<1x128xf32, #tpu.memory_space<vmem>>, vector<1x128xf32>
    %4 = vector.broadcast %3 : vector<1x128xf32> to vector<16x128xf32>
    %5 = arith.addf %2, %4 : vector<16x128xf32>
    %cst_5 = arith.constant 0.000000e+00 : f32
    %6 = vector.broadcast %cst_5 : f32 to vector<16x128xf32>
    %7 = arith.maximumf %5, %6 : vector<16x128xf32>
    %c0_6 = arith.constant 0 : index
    %c0_7 = arith.constant 0 : index
    %8 = vector.load %arg4[%c0_6, %c0_7] : memref<128x128xf32, #tpu.memory_space<vmem>>, vector<128x128xf32>
    %cst_8 = arith.constant dense<0.000000e+00> : vector<16x128xf32>
    %9 = tpu.matmul %7, %8, %cst_8 {dimension_numbers = #tpu.dot_dimension_numbers<[1], [0], [0], [1], [0, 0, 1, 1], [], []>} : vector<16x128xf32>, vector<128x128xf32>, vector<16x128xf32> -> vector<16x128xf32>
    %c0_9 = arith.constant 0 : index
    %c0_10 = arith.constant 0 : index
    %10 = vector.load %arg5[%c0_9, %c0_10] : memref<1x128xf32, #tpu.memory_space<vmem>>, vector<1x128xf32>
    %11 = vector.broadcast %10 : vector<1x128xf32> to vector<16x128xf32>
    %12 = arith.addf %9, %11 : vector<16x128xf32>
    %c0_11 = arith.constant 0 : index
    %c0_12 = arith.constant 0 : index
    %13 = vector.load %arg6[%c0_11, %c0_12] : memref<16x128xf32, #tpu.memory_space<vmem>>, vector<16x128xf32>
    tpu.vector_store %arg6[%c0_11, %c0_12], %12 {strides = array<i32>} : memref<16x128xf32, #tpu.memory_space<vmem>>, vector<16x128xf32>,
    return
  }
  func.func @transform_0(%arg0: i32) -> (i32, i32) {
    %c0_i32 = arith.constant 0 : i32
    %c0_i32_0 = arith.constant 0 : i32
    return %arg0, %c0_i32 : i32, i32
  }
  func.func @transform_1(%arg0: i32) -> (i32, i32) {
    %c0_i32 = arith.constant 0 : i32
    %c0_i32_0 = arith.constant 0 : i32
    %c0_i32_1 = arith.constant 0 : i32
    return %c0_i32, %c0_i32_0 : i32, i32
  }
  func.func @transform_2(%arg0: i32) -> (i32, i32) {
    %c0_i32 = arith.constant 0 : i32
    %c0_i32_0 = arith.constant 0 : i32
    %c0_i32_1 = arith.constant 0 : i32
    return %c0_i32, %c0_i32_0 : i32, i32
  }
  func.func @transform_3(%arg0: i32) -> (i32, i32) {
    %c0_i32 = arith.constant 0 : i32
    %c0_i32_0 = arith.constant 0 : i32
    %c0_i32_1 = arith.constant 0 : i32
    return %c0_i32, %c0_i32_0 : i32, i32
  }
  func.func @transform_4(%arg0: i32) -> (i32, i32) {
    %c0_i32 = arith.constant 0 : i32
    %c0_i32_0 = arith.constant 0 : i32
    %c0_i32_1 = arith.constant 0 : i32
    return %c0_i32, %c0_i32_0 : i32, i32
  }
  func.func @transform_5(%arg0: i32) -> (i32, i32) {
    %c0_i32 = arith.constant 0 : i32
    %c0_i32_0 = arith.constant 0 : i32
    return %arg0, %c0_i32 : i32, i32
  }
}

</mosaic_0001>

<bundles_post_ra>
// kernel: two_layer_net.1
= control target key start
LH: loop header
LB: loop body
LE: loop exit
PB: predicated region body
PF: predicated region fallthrough
CT: control target
= control target key end

     0   :  { %10 = vsyncpa [#allocation3], 0  ;;  %s298_s0 = inlined_call_operand.vmem [shape: f32[16,128], index: 0, kind: input, shape index: {}]   ;;  %s299_s1 = inlined_call_operand.hbm [shape: f32[128,128], index: 1, kind: input, shape index: {}]   ;;  %s300_s2 = inlined_call_operand.vmem [shape: f32[1,128], index: 2, kind: input, shape index: {}]   ;;  %s301_s3 = inlined_call_operand.hbm [shape: f32[128,128], index: 3, kind: input, shape index: {}]   ;;  %s302_s4 = inlined_call_operand.vmem [shape: f32[1,128], index: 4, kind: input, shape index: {}]   ;;  %s303_s5 = inlined_call_operand.vmem [shape: f32[16,128], index: 5, kind: output, shape index: {}]  }
   0x1   :  { %s18_s20 = sshll.u32 %s299_s1, 4  ;;  %s19_s20 = int_to_ptr.hbm [resolvable:$true] %s18_s20 }
   0x2   :  { %11 = vsyncpa [#allocation5], 0  ;;  %s240_s21 = smov [#allocation2]   ;;  %s33_s25 = sshll.u32 %s301_s3, 4  ;;  %s34_s25 = int_to_ptr.hbm [resolvable:$true] %s33_s25 }
   0x3   :  { %s20_s22 = sshll.u32 %s240_s21, 4  ;;  %s241_s26 = smov 128   ;;  %s21_s22 = int_to_ptr.vmem [resolvable:$true] %s20_s22 }
   0x4   :  { %s242_s27 = smov 8   ;;  %s243_s28 = smov [#allocation4]  }
   0x5   :  { %26 = dma.hbm_to_vmem [thread:$0]  %s19_s20, 2048, %s21_s22, [#allocation3], %s241_s26, %s241_s26, %s242_s27  }
   0x6   :  { %s35_s29 = sshll.u32 %s243_s28, 4  ;;  %s36_s29 = int_to_ptr.vmem [resolvable:$true] %s35_s29 }
   0x7   :  { %41 = dma.hbm_to_vmem [thread:$0]  %s34_s25, 2048, %s36_s29, [#allocation5], %s241_s26, %s241_s26, %s242_s27  }
   0x8   :  { %236 = dma.done.wait [#allocation3], 2048  }
   0x9   :  { %237 = vsyncadd [#allocation3], 4294965248 }
   0xa   :  { %238 = dma.done.wait [#allocation5], 2048  }
   0xb   :  { %239 = vsyncadd [#allocation5], 4294965248  ;;  %v69_v0 = vld [vmem:[#allocation2 + $0x78] sm:$0xff]  ;;  %v68_v1 = vld [vmem:[#allocation2 + $0x70] sm:$0xff] }
   0xc   :  { %150 = vmatpush.msra.mxu2 %v69_v0  ;;  %74 = vmatpush.msra.mxu0 %v69_v0  ;;  %v67_v2 = vld [vmem:[#allocation2 + $0x68] sm:$0xff]  ;;  %v66_v3 = vld [vmem:[#allocation2 + $0x60] sm:$0xff]  ;;  %v65_v4 = vld [vmem:[#allocation2 + $0x58] sm:$0xff] }
   0xd   :  { %v114_v5 = vld [vmem:[#allocation4 + $0x78] sm:$0xff]  ;;  %v113_v6 = vld [vmem:[#allocation4 + $0x70] sm:$0xff]  ;;  %v112_v8 = vld [vmem:[#allocation4 + $0x68] sm:$0xff] }
   0xe   :  { %151 = vmatpush.msra.mxu2 %v68_v1  ;;  %75 = vmatpush.msra.mxu0 %v68_v1  ;;  %v64_v7 = vld [vmem:[#allocation2 + $0x50] sm:$0xff]  ;;  %v63_v9 = vld [vmem:[#allocation2 + $0x48] sm:$0xff]  ;;  %v111_v10 = vld [vmem:[#allocation4 + $0x60] sm:$0xff] }
   0xf   :  { %166 = vmatpush.msra.mxu3 %v114_v5  ;;  %119 = vmatpush.msra.mxu1 %v114_v5  ;;  %v62_v11 = vld [vmem:[#allocation2 + $0x40] sm:$0xff]  ;;  %v110_v12 = vld [vmem:[#allocation4 + $0x58] sm:$0xff]  ;;  %v109_v14 = vld [vmem:[#allocation4 + $0x50] sm:$0xff] }
  0x10   :  { %152 = vmatpush.msra.mxu2 %v67_v2  ;;  %76 = vmatpush.msra.mxu0 %v67_v2  ;;  %v61_v13 = vld [vmem:[#allocation2 + $0x38] sm:$0xff]  ;;  %v60_v15 = vld [vmem:[#allocation2 + $0x30] sm:$0xff]  ;;  %v108_v16 = vld [vmem:[#allocation4 + $0x48] sm:$0xff] }
  0x11   :  { %167 = vmatpush.msra.mxu3 %v113_v6  ;;  %120 = vmatpush.msra.mxu1 %v113_v6  ;;  %v59_v17 = vld [vmem:[#allocation2 + $0x28] sm:$0xff]  ;;  %v107_v18 = vld [vmem:[#allocation4 + $0x40] sm:$0xff]  ;;  %v106_v20 = vld [vmem:[#allocation4 + $0x38] sm:$0xff] }
  0x12   :  { %153 = vmatpush.msra.mxu2 %v66_v3  ;;  %77 = vmatpush.msra.mxu0 %v66_v3  ;;  %v58_v19 = vld [vmem:[#allocation2 + $0x20] sm:$0xff]  ;;  %v57_v21 = vld [vmem:[#allocation2 + $0x18] sm:$0xff]  ;;  %v105_v22 = vld [vmem:[#allocation4 + $0x30] sm:$0xff] }
  0x13   :  { %168 = vmatpush.msra.mxu3 %v112_v8  ;;  %121 = vmatpush.msra.mxu1 %v112_v8  ;;  %v56_v23 = vld [vmem:[#allocation2 + $0x10] sm:$0xff]  ;;  %v104_v24 = vld [vmem:[#allocation4 + $0x28] sm:$0xff]  ;;  %v103_v26 = vld [vmem:[#allocation4 + $0x20] sm:$0xff] }
  0x14   :  { %154 = vmatpush.msra.mxu2 %v65_v4  ;;  %78 = vmatpush.msra.mxu0 %v65_v4  ;;  %v55_v25 = vld [vmem:[#allocation2 + $0x8] sm:$0xff]  ;;  %v54_v27 = vld [vmem:[#allocation2] sm:$0xff]  ;;  %v102_v30 = vld [vmem:[#allocation4 + $0x18] sm:$0xff] }
  0x15   :  { %169 = vmatpush.msra.mxu3 %v111_v10  ;;  %122 = vmatpush.msra.mxu1 %v111_v10  ;;  %v53_v28 = vld [vmem:[%s298_s0 + $0x8] sm:$0xff]  ;;  %v52_v29 = vld [vmem:[%s298_s0] sm:$0xff]  ;;  %v101_v31 = vld [vmem:[#allocation4 + $0x10] sm:$0xff] }
  0x16   :  { %155 = vmatpush.msra.mxu2 %v64_v7  ;;  %79 = vmatpush.msra.mxu0 %v64_v7  ;;  %v100_v32 = vld [vmem:[#allocation4 + $0x8] sm:$0xff]  ;;  %v99_v33 = vld [vmem:[#allocation4] sm:$0xff] }
  0x17   :  { %170 = vmatpush.msra.mxu3 %v110_v12  ;;  %123 = vmatpush.msra.mxu1 %v110_v12  ;;  %v186_v34 = vld [vmem:[%s300_s2] ss:$0 sm:$0xff] }
  0x18   :  { %156 = vmatpush.msra.mxu2 %v63_v9  ;;  %80 = vmatpush.msra.mxu0 %v63_v9  ;;  %v187_v41 = vld [vmem:[%s302_s4] ss:$0 sm:$0xff] }
  0x19   :  { %171 = vmatpush.msra.mxu3 %v109_v14  ;;  %124 = vmatpush.msra.mxu1 %v109_v14 }
  0x1a   :  { %157 = vmatpush.msra.mxu2 %v62_v11  ;;  %81 = vmatpush.msra.mxu0 %v62_v11 }
  0x1b   :  { %172 = vmatpush.msra.mxu3 %v108_v16  ;;  %125 = vmatpush.msra.mxu1 %v108_v16 }
  0x1c   :  { %158 = vmatpush.msra.mxu2 %v61_v13  ;;  %82 = vmatpush.msra.mxu0 %v61_v13 }
  0x1d   :  { %173 = vmatpush.msra.mxu3 %v107_v18  ;;  %126 = vmatpush.msra.mxu1 %v107_v18 }
  0x1e   :  { %159 = vmatpush.msra.mxu2 %v60_v15  ;;  %83 = vmatpush.msra.mxu0 %v60_v15 }
  0x1f   :  { %174 = vmatpush.msra.mxu3 %v106_v20  ;;  %127 = vmatpush.msra.mxu1 %v106_v20 }
  0x20   :  { %160 = vmatpush.msra.mxu2 %v59_v17  ;;  %84 = vmatpush.msra.mxu0 %v59_v17 }
  0x21   :  { %175 = vmatpush.msra.mxu3 %v105_v22  ;;  %128 = vmatpush.msra.mxu1 %v105_v22 }
  0x22   :  { %161 = vmatpush.msra.mxu2 %v58_v19  ;;  %85 = vmatpush.msra.mxu0 %v58_v19 }
  0x23   :  { %176 = vmatpush.msra.mxu3 %v104_v24  ;;  %129 = vmatpush.msra.mxu1 %v104_v24 }
  0x24   :  { %162 = vmatpush.msra.mxu2 %v57_v21  ;;  %86 = vmatpush.msra.mxu0 %v57_v21 }
  0x25   :  { %177 = vmatpush.msra.mxu3 %v103_v26  ;;  %130 = vmatpush.msra.mxu1 %v103_v26 }
  0x26   :  { %163 = vmatpush.msra.mxu2 %v56_v23  ;;  %87 = vmatpush.msra.mxu0 %v56_v23 }
  0x27   :  { %178 = vmatpush.msra.mxu3 %v102_v30  ;;  %131 = vmatpush.msra.mxu1 %v102_v30 }
  0x28   :  { %164 = vmatpush.msra.mxu2 %v55_v25  ;;  %88 = vmatpush.msra.mxu0 %v55_v25 }
  0x29   :  { %179 = vmatpush.msra.mxu3 %v101_v31  ;;  %132 = vmatpush.msra.mxu1 %v101_v31 }
  0x2a   :  { %165 = vmatpush.msra.mxu2 %v54_v27  ;;  %89 = vmatpush.msra.mxu0 %v54_v27 }
  0x2b   :  { %93 = vmatmul.f32.vlgmr.msra.gmra.mxu2 %v53_v28  ;;  %90 = vmatmul.f32.vlgmr.msra.gmra.mxu0 %v52_v29 }
  0x2c   :  { %180 = vmatpush.msra.mxu3 %v100_v32  ;;  %133 = vmatpush.msra.mxu1 %v100_v32 }
  0x2e   :  { %181 = vmatpush.msra.mxu3 %v99_v33  ;;  %134 = vmatpush.msra.mxu1 %v99_v33 }
  0xa8   :  { %v91_v35 = vpop.f32.mrf.mxu0 }
  0xa9   :  { %v92_v36 = vadd.f32 %v186_v34, %v91_v35 }
  0xab   :  { %v97_v37 = vmax.f32 %v92_v36, 0.0 }
  0xad   :  { %135 = vmatmul.f32.vlgmr.msra.gmra.mxu1 %v97_v37 }
  0xae   :  { %v94_v38 = vpop.f32.mrf.mxu2 }
  0xaf   :  { %v95_v39 = vadd.f32 %v186_v34, %v94_v38 }
  0xb1   :  { %v98_v40 = vmax.f32 %v95_v39, 0.0 }
  0xb3   :  { %138 = vmatmul.f32.vlgmr.msra.gmra.mxu3 %v98_v40 }
 0x12a   :  { %v136_v42 = vpop.f32.mrf.mxu1 }
 0x12b   :  { %v137_v43 = vadd.f32 %v187_v41, %v136_v42 }
 0x12d   :  { %142 = vst [vmem:[%s303_s5] sm:$0xff] %v137_v43 }
 0x136   :  { %v139_v44 = vpop.f32.mrf.mxu3 }
 0x137   :  { %v140_v45 = vadd.f32 %v187_v41, %v139_v44 }
 0x139   :  { %143 = vst [vmem:[%s303_s5 + $0x8] sm:$0xff] %v140_v45 }
 0x13a   :  { %148 = vsyncpa [#allocation3], 1 }
 0x13b   :  { %149 = vsyncpa [#allocation5], 1 }

</bundles_post_ra>
